<compile_context>
chip_gen: v7x
topology: tpu7x:2x2x1
jax: 0.10.0
libtpu: 0.0.40
codegen_flags: <defaults>
</compile_context>

<pallas_src>
import functools

import jax
import jax.numpy as jnp
from jax.experimental import pallas as pl
from jax.experimental.pallas import tpu as pltpu

LOG_STD_MIN = -20.0
LOG_STD_MAX = 2.0

LANE = 128     # lane width
SUBLANE = 8    # f32 sublane


def _round_up(x, m):
    return ((x + m - 1) // m) * m


def policy_kernel(x_ref, w1_ref, b1_ref, wh_ref, bh_ref, out_ref, *, action_dim):
    # fc1 + relu (f32 accumulate on MXU)
    x = x_ref[...]
    h = jnp.dot(x, w1_ref[...], preferred_element_type=jnp.float32) + b1_ref[...]
    h = jnp.maximum(h, 0.0)

    # Fused heads: one matmul produces [TILE_B, 2*action_dim] compactly;
    # columns [0, A) -> mu head, [A, 2A) -> log_std head.
    head = jnp.dot(h, wh_ref[...], preferred_element_type=jnp.float32) + bh_ref[...]

    # Select per-column between tanh(mu) and exp(clip(log_std)) without any
    # non-lane-aligned slicing. Extra transcendentals are negligible (EUP slot).
    col = jax.lax.broadcasted_iota(jnp.int32, head.shape, 1)
    mu_part = jnp.tanh(head)
    std_part = jnp.exp(jnp.clip(head, LOG_STD_MIN, LOG_STD_MAX))
    out_ref[...] = jnp.where(col < action_dim, mu_part, std_part).astype(out_ref.dtype)


def prepare_params(params):
    """One-time (non-hot-path) packing of PyTorch-convention params:
       - transpose weights to [in, out]
       - pad the hidden dim to a lane multiple (128)
       - fuse mu / log_std head weights & biases into one compact slab of width
         2*action_dim (no lane padding on the action axis)."""
    hidden_dim, state_dim = params["w1"].shape
    action_dim = params["wmu"].shape[0]
    hid_pad = _round_up(hidden_dim, LANE)
    act2 = 2 * action_dim

    w1 = jnp.zeros((state_dim, hid_pad), jnp.float32)
    w1 = w1.at[:, :hidden_dim].set(params["w1"].T)
    b1 = jnp.zeros((1, hid_pad), jnp.float32)
    b1 = b1.at[:, :hidden_dim].set(params["b1"])

    wh = jnp.zeros((hid_pad, act2), jnp.float32)
    wh = wh.at[:hidden_dim, :action_dim].set(params["wmu"].T)
    wh = wh.at[:hidden_dim, action_dim:].set(params["wls"].T)
    bh = jnp.concatenate([params["bmu"], params["bls"]]).reshape(1, act2).astype(jnp.float32)

    return {
        "w1": w1, "b1": b1, "wh": wh, "bh": bh,
        "dims": (state_dim, hidden_dim, action_dim, hid_pad),
    }


def _vmem_limit_bytes(tile_b, state_dim, hid_pad, act2):
    f32 = 4
    tile = f32 * (
        2 * tile_b * state_dim              # x (double-buffered)
        + 2 * tile_b * act2                 # packed output (double-buffered)
        + 2 * (state_dim * hid_pad + hid_pad)   # w1 + b1
        + 2 * (hid_pad * act2 + act2)       # fused head weights + bias
        + 2 * tile_b * hid_pad              # h / head intermediates
    )
    # x2 headroom for Mosaic internals, clamped well below v7x's 64 MiB physical.
    return int(min(32 * 1024 * 1024, max(8 * 1024 * 1024, 2 * tile)))


@functools.partial(jax.jit, static_argnames=("dims",))
def _policy_forward_impl(x, w1, b1, wh, bh, dims):
    state_dim, hidden_dim, action_dim, hid_pad = dims
    act2 = 2 * action_dim
    B = x.shape[0]

    # Batch tile: multiple of 8 sublanes, large (<=1024) to amortize per-step
    # overhead, and sized so moderate batches still produce >=2 grid steps
    # (megacore sharding on v7x). No wrapper-side padding of x: Pallas handles
    # the ragged last block (rows are independent, OOB writes masked).
    TILE_B = min(1024, _round_up(pl.cdiv(max(B, 1), 2), SUBLANE))
    grid = (pl.cdiv(B, TILE_B),)

    flops = 2 * B * state_dim * hid_pad + 2 * B * hid_pad * act2
    transcendentals = 2 * B * act2  # tanh + exp over the packed head
    bytes_accessed = 4 * (
        B * state_dim                       # x
        + state_dim * hid_pad + hid_pad     # w1, b1
        + hid_pad * act2 + act2             # fused head weights / bias
        + B * act2                          # packed compact output
    )

    out = pl.pallas_call(
        functools.partial(policy_kernel, action_dim=action_dim),
        out_shape=jax.ShapeDtypeStruct((B, act2), jnp.float32),
        grid=grid,
        in_specs=[
            pl.BlockSpec((TILE_B, state_dim), lambda i: (i, 0)),    # x: tiled over batch
            pl.BlockSpec((state_dim, hid_pad), lambda i: (0, 0)),   # w1: VMEM-resident
            pl.BlockSpec((1, hid_pad), lambda i: (0, 0)),           # b1
            pl.BlockSpec((hid_pad, act2), lambda i: (0, 0)),        # fused head weights
            pl.BlockSpec((1, act2), lambda i: (0, 0)),              # fused head bias
        ],
        out_specs=pl.BlockSpec((TILE_B, act2), lambda i: (i, 0)),   # packed [mu | std]
        compiler_params=pltpu.CompilerParams(
            dimension_semantics=("parallel",),
            vmem_limit_bytes=_vmem_limit_bytes(TILE_B, state_dim, hid_pad, act2),
        ),
        cost_estimate=pl.CostEstimate(
            flops=flops,
            transcendentals=transcendentals,
            bytes_accessed=bytes_accessed,
        ),
    )(x, w1, b1, wh, bh)

    # Cheap wrapper-side unpack of the compact output slab.
    return out[:, :action_dim], out[:, action_dim:]


def policy_forward(x, packed):
    """x: [B, state_dim] float32. packed: output of prepare_params().
    Returns (mu, std), each [B, action_dim]."""
    return _policy_forward_impl(
        x, packed["w1"], packed["b1"], packed["wh"], packed["bh"], packed["dims"]
    )


def init_params(key, state_dim, action_dim, hidden_dim=128):
    """Deterministic init mimicking nn.Linear default: U(-1/sqrt(fan_in), 1/sqrt(fan_in))."""
    ks = jax.random.split(key, 6)

    def linear_init(kw, kb, out_f, in_f):
        bound = 1.0 / jnp.sqrt(in_f)
        w = jax.random.uniform(kw, (out_f, in_f), jnp.float32, -bound, bound)
        b = jax.random.uniform(kb, (out_f,), jnp.float32, -bound, bound)
        return w, b

    w1, b1 = linear_init(ks[0], ks[1], hidden_dim, state_dim)
    wmu, bmu = linear_init(ks[2], ks[3], action_dim, hidden_dim)
    wls, bls = linear_init(ks[4], ks[5], action_dim, hidden_dim)
    return {"w1": w1, "b1": b1, "wmu": wmu, "bmu": bmu, "wls": wls, "bls": bls}


def reference_forward(x, params):
    h = jnp.maximum(x @ params["w1"].T + params["b1"], 0.0)
    mu = jnp.tanh(h @ params["wmu"].T + params["bmu"])
    log_std = jnp.clip(h @ params["wls"].T + params["bls"], LOG_STD_MIN, LOG_STD_MAX)
    return mu, jnp.exp(log_std)


if __name__ == "__main__":
    key = jax.random.PRNGKey(0)
    k_params, k_x = jax.random.split(key)

    batch = 2
    state_dim = 8
    action_dim = 4
    hidden_dim = 32

    params = init_params(k_params, state_dim, action_dim, hidden_dim)
    packed = prepare_params(params)   # one-time packing, outside the hot path
    x = jax.random.normal(k_x, (batch, state_dim), jnp.float32)

    mu, std = policy_forward(x, packed)
    jax.block_until_ready((mu, std))

    mu_ref, std_ref = reference_forward(x, params)
    assert mu.shape == (batch, action_dim) and std.shape == (batch, action_dim)
    assert jnp.allclose(mu, mu_ref, atol=1e-5, rtol=1e-5), "mu mismatch"
    assert jnp.allclose(std, std_ref, atol=1e-5, rtol=1e-5), "std mismatch"

    print("KERNEL_OK")
</pallas_src>

<mosaic_0001>
module attributes {stable_mosaic.version = 11 : i64} {
  func.func @policy_kernel(%arg0: i32, %arg1: memref<8x8xf32, #tpu.memory_space<vmem>>, %arg2: memref<8x128xf32, #tpu.memory_space<vmem>>, %arg3: memref<1x128xf32, #tpu.memory_space<vmem>>, %arg4: memref<128x8xf32, #tpu.memory_space<vmem>>, %arg5: memref<1x8xf32, #tpu.memory_space<vmem>>, %arg6: memref<8x8xf32, #tpu.memory_space<vmem>>) attributes {dimension_semantics = [#tpu.dimension_semantics<parallel>], iteration_bounds = array<i64: 1>, scalar_prefetch = 0 : i64, scratch_operands = 0 : i64, tpu.core_type = #tpu.core_type<tc>, window_params = [{transform_indices = @transform_0, window_bounds = array<i64: 8, 8>}, {pipeline_mode = #tpu.pipeline_mode<synchronous>, transform_indices = @transform_1, window_bounds = array<i64: 8, 128>}, {pipeline_mode = #tpu.pipeline_mode<synchronous>, transform_indices = @transform_2, window_bounds = array<i64: 1, 128>}, {pipeline_mode = #tpu.pipeline_mode<synchronous>, transform_indices = @transform_3, window_bounds = array<i64: 128, 8>}, {pipeline_mode = #tpu.pipeline_mode<synchronous>, transform_indices = @transform_4, window_bounds = array<i64: 1, 8>}, {transform_indices = @transform_5, window_bounds = array<i64: 8, 8>}]} {
    %c0 = arith.constant 0 : index
    %c0_0 = arith.constant 0 : index
    %0 = vector.load %arg1[%c0, %c0_0] : memref<8x8xf32, #tpu.memory_space<vmem>>, vector<8x8xf32>
    %c0_1 = arith.constant 0 : index
    %c0_2 = arith.constant 0 : index
    %1 = vector.load %arg2[%c0_1, %c0_2] : memref<8x128xf32, #tpu.memory_space<vmem>>, vector<8x128xf32>
    %cst = arith.constant dense<0.000000e+00> : vector<8x128xf32>
    %2 = tpu.matmul %0, %1, %cst {dimension_numbers = #tpu.dot_dimension_numbers<[1], [0], [0], [1], [0, 0, 1, 1], [], []>} : vector<8x8xf32>, vector<8x128xf32>, vector<8x128xf32> -> vector<8x128xf32>
    %c0_3 = arith.constant 0 : index
    %c0_4 = arith.constant 0 : index
    %3 = vector.load %arg3[%c0_3, %c0_4] : memref<1x128xf32, #tpu.memory_space<vmem>>, vector<1x128xf32>
    %4 = vector.broadcast %3 : vector<1x128xf32> to vector<8x128xf32>
    %5 = arith.addf %2, %4 : vector<8x128xf32>
    %cst_5 = arith.constant 0.000000e+00 : f32
    %6 = vector.broadcast %cst_5 : f32 to vector<8x128xf32>
    %7 = arith.maximumf %5, %6 : vector<8x128xf32>
    %c0_6 = arith.constant 0 : index
    %c0_7 = arith.constant 0 : index
    %8 = vector.load %arg4[%c0_6, %c0_7] : memref<128x8xf32, #tpu.memory_space<vmem>>, vector<128x8xf32>
    %cst_8 = arith.constant dense<0.000000e+00> : vector<8x8xf32>
    %9 = tpu.matmul %7, %8, %cst_8 {dimension_numbers = #tpu.dot_dimension_numbers<[1], [0], [0], [1], [0, 0, 1, 1], [], []>} : vector<8x128xf32>, vector<128x8xf32>, vector<8x8xf32> -> vector<8x8xf32>
    %c0_9 = arith.constant 0 : index
    %c0_10 = arith.constant 0 : index
    %10 = vector.load %arg5[%c0_9, %c0_10] : memref<1x8xf32, #tpu.memory_space<vmem>>, vector<1x8xf32>
    %11 = vector.broadcast %10 : vector<1x8xf32> to vector<8x8xf32>
    %12 = arith.addf %9, %11 : vector<8x8xf32>
    %13 = tpu.iota {dimensions = array<i32: 1>} : vector<8x8xi32>
    %14 = math.tanh %12 : vector<8x8xf32>
    %cst_11 = arith.constant -2.000000e+01 : f32
    %cst_12 = arith.constant 2.000000e+00 : f32
    %15 = vector.broadcast %cst_11 : f32 to vector<8x8xf32>
    %16 = arith.maximumf %15, %12 : vector<8x8xf32>
    %17 = vector.broadcast %cst_12 : f32 to vector<8x8xf32>
    %18 = arith.minimumf %17, %16 : vector<8x8xf32>
    %19 = math.exp %18 : vector<8x8xf32>
    %c4_i32 = arith.constant 4 : i32
    %20 = vector.broadcast %c4_i32 : i32 to vector<8x8xi32>
    %21 = arith.cmpi slt, %13, %20 : vector<8x8xi32>
    %22 = arith.select %21, %14, %19 : vector<8x8xi1>, vector<8x8xf32>
    %c0_13 = arith.constant 0 : index
    %c0_14 = arith.constant 0 : index
    %23 = vector.load %arg6[%c0_13, %c0_14] : memref<8x8xf32, #tpu.memory_space<vmem>>, vector<8x8xf32>
    tpu.vector_store %arg6[%c0_13, %c0_14], %22 {strides = array<i32>} : memref<8x8xf32, #tpu.memory_space<vmem>>, vector<8x8xf32>,
    return
  }
  func.func @transform_0(%arg0: i32) -> (i32, i32) {
    %c0_i32 = arith.constant 0 : i32
    %c0_i32_0 = arith.constant 0 : i32
    return %arg0, %c0_i32 : i32, i32
  }
  func.func @transform_1(%arg0: i32) -> (i32, i32) {
    %c0_i32 = arith.constant 0 : i32
    %c0_i32_0 = arith.constant 0 : i32
    %c0_i32_1 = arith.constant 0 : i32
    return %c0_i32, %c0_i32_0 : i32, i32
  }
  func.func @transform_2(%arg0: i32) -> (i32, i32) {
    %c0_i32 = arith.constant 0 : i32
    %c0_i32_0 = arith.constant 0 : i32
    %c0_i32_1 = arith.constant 0 : i32
    return %c0_i32, %c0_i32_0 : i32, i32
  }
  func.func @transform_3(%arg0: i32) -> (i32, i32) {
    %c0_i32 = arith.constant 0 : i32
    %c0_i32_0 = arith.constant 0 : i32
    %c0_i32_1 = arith.constant 0 : i32
    return %c0_i32, %c0_i32_0 : i32, i32
  }
  func.func @transform_4(%arg0: i32) -> (i32, i32) {
    %c0_i32 = arith.constant 0 : i32
    %c0_i32_0 = arith.constant 0 : i32
    %c0_i32_1 = arith.constant 0 : i32
    return %c0_i32, %c0_i32_0 : i32, i32
  }
  func.func @transform_5(%arg0: i32) -> (i32, i32) {
    %c0_i32 = arith.constant 0 : i32
    %c0_i32_0 = arith.constant 0 : i32
    return %arg0, %c0_i32 : i32, i32
  }
}

</mosaic_0001>

<bundles_post_ra>
// kernel: _policy_forward_impl.1
= control target key start
LH: loop header
LB: loop body
LE: loop exit
PB: predicated region body
PF: predicated region fallthrough
CT: control target
= control target key end

     0   :  { %vm29_vm0 = vcmask 64512   ;;  %v339_v2 = vmov 0.0   ;;  %vm340_vm1 = vmmov 0   ;;  %v341_v6 = vmov 0.0|0.0   ;;  %s437_s0 = inlined_call_operand.vmem [shape: f32[2,8], index: 0, kind: input, shape index: {}]   ;;  %s438_s1 = inlined_call_operand.vmem [shape: f32[8,128], index: 1, kind: input, shape index: {}]   ;;  %s439_s2 = inlined_call_operand.vmem [shape: f32[1,128], index: 2, kind: input, shape index: {}]   ;;  %s440_s3 = inlined_call_operand.vmem [shape: f32[128,8], index: 3, kind: input, shape index: {}]   ;;  %s441_s4 = inlined_call_operand.vmem [shape: f32[1,8], index: 4, kind: input, shape index: {}]   ;;  %s442_s5 = inlined_call_operand.vmem [shape: f32[2,8], index: 5, kind: output, shape index: {}]  }
   0x1   :  { %v21_v0 = vld [vmem:[%s438_s1] sm:$0xff]  ;;  %268 = vmatprep.subr.mxu0 %v339_v2  ;;  %270 = vmatprep.mubr.msk.f32.mxu0 %vm340_vm1, %v339_v2  ;;  %v105_v4 = vld [vmem:[%s440_s3 + $0x8] sm:$0xff]  ;;  %v106_v5 = vld [vmem:[%s440_s3 + $0x10] sm:$0xff]  ;;  %v197_v40 = vlaneseq }
   0x2   :  { %v20_v1 = vld [vmem:[%s437_s0] sm:$0xff]  ;;  %269 = vmatpush3.msra.mxu0 %v21_v0  ;;  %308 = vmatprep.subr.bf16.mxu1 %v341_v6  ;;  %v107_v8 = vld [vmem:[%s440_s3 + $0x18] sm:$0xff]  ;;  %v109_v11 = vld [vmem:[%s440_s3 + $0x28] sm:$0xff] }
   0x3   :  { %v104_v3 = vld [vmem:[%s440_s3] sm:$0xff]  ;;  %271 = vmatmul.mubr.msk.f32.vlgmr.msra.gmra.mrb[0].mxu0 %vm29_vm0, %v20_v1  ;;  %305 = vmatprep.mubr.msk.f32.mxu1 %vm340_vm1, %v339_v2  ;;  %v312_v9 = vpack.c.bf16 %v107_v8, %v106_v5  ;;  %v110_v13 = vld [vmem:[%s440_s3 + $0x30] sm:$0xff]  ;;  %v111_v14 = vld [vmem:[%s440_s3 + $0x38] sm:$0xff]  ;;  %v198_v41 = vand.u32 127, %v197_v40 }
   0x4   :  { %v309_v7 = vpack.c.bf16 %v105_v4, %v104_v3  ;;  %v108_v10 = vld [vmem:[%s440_s3 + $0x20] sm:$0xff]  ;;  %v318_v15 = vpack.c.bf16 %v111_v14, %v110_v13  ;;  %v113_v17 = vld [vmem:[%s440_s3 + $0x48] sm:$0xff]  ;;  %v114_v19 = vld [vmem:[%s440_s3 + $0x50] sm:$0xff] }
   0x5   :  { %v315_v12 = vpack.c.bf16 %v109_v11, %v108_v10  ;;  %v112_v16 = vld [vmem:[%s440_s3 + $0x40] sm:$0xff]  ;;  %v115_v20 = vld [vmem:[%s440_s3 + $0x58] sm:$0xff]  ;;  %v117_v23 = vld [vmem:[%s440_s3 + $0x68] sm:$0xff]  ;;  %vm204_vm2 = vcmp.lt.s32.totalorder %v198_v41, 4 }
   0x6   :  { %310 = vmatpush3.bf16.msra.mxu1 %v309_v7  ;;  %v321_v18 = vpack.c.bf16 %v113_v17, %v112_v16  ;;  %v324_v21 = vpack.c.bf16 %v115_v20, %v114_v19  ;;  %v116_v22 = vld [vmem:[%s440_s3 + $0x60] sm:$0xff]  ;;  %v118_v25 = vld [vmem:[%s440_s3 + $0x70] sm:$0xff]  ;;  %v119_v26 = vld [vmem:[%s440_s3 + $0x78] sm:$0xff] }
   0x7   :  { %311 = vmatprep.subr.bf16.mxu1 %v341_v6  ;;  %v327_v24 = vpack.c.bf16 %v117_v23, %v116_v22  ;;  %v330_v27 = vpack.c.bf16 %v119_v26, %v118_v25  ;;  %v246_v28 = vld [vmem:[%s439_s2] ss:$0 sm:$0xff] }
   0x8   :  { %v248_v33 = vld [vmem:[%s441_s4] ss:$0 sm:$0xff] }
   0xa   :  { %313 = vmatpush3.bf16.msra.mxu1 %v312_v9 }
   0xb   :  { %314 = vmatprep.subr.bf16.mxu1 %v341_v6 }
   0xe   :  { %316 = vmatpush3.bf16.msra.mxu1 %v315_v12 }
   0xf   :  { %317 = vmatprep.subr.bf16.mxu1 %v341_v6 }
  0x12   :  { %319 = vmatpush3.bf16.msra.mxu1 %v318_v15 }
  0x13   :  { %320 = vmatprep.subr.bf16.mxu1 %v341_v6 }
  0x16   :  { %322 = vmatpush3.bf16.msra.mxu1 %v321_v18 }
  0x17   :  { %323 = vmatprep.subr.bf16.mxu1 %v341_v6 }
  0x1a   :  { %325 = vmatpush3.bf16.msra.mxu1 %v324_v21 }
  0x1b   :  { %326 = vmatprep.subr.bf16.mxu1 %v341_v6 }
  0x1e   :  { %328 = vmatpush3.bf16.msra.mxu1 %v327_v24 }
  0x1f   :  { %329 = vmatprep.subr.bf16.mxu1 %v341_v6 }
  0x22   :  { %331 = vmatpush3.bf16.msra.mxu1 %v330_v27 }
  0xd6   :  { %v99_v29 = vpop.f32.mrb[0].mxu0 }
  0xd7   :  { %v100_v30 = vadd.f32 %v246_v28, %v99_v29  ;;  %v272_v31 = vpop.f32.mrb[1].mxu0 }
  0xd9   :  { %v103_v32 = vmax.f32 %v100_v30, 0.0 }
  0xdb   :  { %306 = vmatmul.mubr.f32.vlgmr.msra.gmra.mrb[0].mxu1 %v103_v32 }
 0x1ae   :  { %v193_v34 = vpop.f32.mrb[0].mxu1 }
 0x1af   :  { %v194_v35 = vadd.f32 %v248_v33, %v193_v34  ;;  %v307_v36 = vpop.f32.mrb[1].mxu1 }
 0x1b1   :  { %v200_v37 = vmax.f32 %v194_v35, -20.0  ;;  %335 = vtanh.f32 %v194_v35 }
 0x1b3   :  { %v201_v38 = vmin.f32 %v200_v37, 2.0 }
 0x1b5   :  { %v202_v39 = vmul.f32 1.442695, %v201_v38 }
 0x1b7   :  { %337 = vpow2.f32 %v202_v39 }
 0x1bb   :  { %v336_v42 = vpop.eup %335 }
 0x1c1   :  { %v338_v43 = vpop.eup %337 }
 0x1c2   :  { %v205_v44 = vsel %vm204_vm2, %v336_v42, %v338_v43 }
 0x1c3   :  { %206 = vst.msk [vmem:[#allocation2] sm:$0xff] %vm29_vm0, %v205_v44 }
 0x1ca   :  { %v224_v45 = vld [vmem:[#allocation2] sm:$0x3] }
 0x1cb   :  { %225 = vst [vmem:[%s442_s5] sm:$0x3] %v224_v45 }

</bundles_post_ra>
